<compile_context>
chip_gen: v6e
topology: v6e:2x2x1
jax: 0.10.0
libtpu: 0.0.40
codegen_flags: <defaults>
</compile_context>

<pallas_src>
import jax
import jax.numpy as jnp
from jax.experimental import pallas as pl
from jax.experimental.pallas import tpu as pltpu

_LANE = 128
_TILE_BYTES_TARGET = 4 * 1024 * 1024      # ~4 MiB per tile (per-generation safe)
_LANE_CAP = 8192                          # max lane width per tile
_VMEM_LIMIT_BYTES = 32 * 1024 * 1024      # explicit: > v5e's 16 MiB default


def _copy_kernel(x_ref, o_ref):
    # Whole-tile load + store (identity).
    o_ref[...] = x_ref[...]


def _sublane_granule(itemsize: int) -> int:
    # Sub-32-bit dtypes pack along sublanes: 8 rows for f32, 16 for bf16,
    # 32 for int8/fp8.
    return max(8, 32 // max(1, itemsize))


def _choose_layout(total: int, itemsize: int):
    """Lane-dense (rows, L) factoring for a 128-aligned element count.

    L is the largest multiple of 128 (<= _LANE_CAP) that exactly divides
    `total`, so rows * L == total (no data padding).  tile_rows is the largest
    dtype-aligned row count giving ~_TILE_BYTES_TARGET per tile; ragged row
    counts are handled by the grid (masked last block), never by padding.
    """
    m = total // _LANE
    k_cap = max(1, _LANE_CAP // _LANE)
    best_k = 1
    for k in range(1, k_cap + 1):
        if m % k == 0:
            best_k = k
    L = best_k * _LANE
    rows = total // L

    g = _sublane_granule(itemsize)
    target_rows = max(1, _TILE_BYTES_TARGET // (L * itemsize))
    if rows <= target_rows or rows < g:
        tile_rows = rows              # single block; block dims == array dims
    else:
        tile_rows = max(g, (target_rows // g) * g)
    return rows, L, tile_rows


def _identity_copy_2d(x2d: jax.Array, tile_rows: int, tile_cols: int,
                      bytes_accessed: int) -> jax.Array:
    rows, cols = x2d.shape
    grid = (pl.cdiv(rows, tile_rows), pl.cdiv(cols, tile_cols))
    return pl.pallas_call(
        _copy_kernel,
        out_shape=jax.ShapeDtypeStruct((rows, cols), x2d.dtype),
        grid_spec=pltpu.PrefetchScalarGridSpec(
            num_scalar_prefetch=0,
            grid=grid,
            in_specs=[pl.BlockSpec((tile_rows, tile_cols), lambda i, j: (i, j))],
            out_specs=pl.BlockSpec((tile_rows, tile_cols), lambda i, j: (i, j)),
        ),
        compiler_params=pltpu.CompilerParams(
            dimension_semantics=("parallel", "parallel"),
            vmem_limit_bytes=_VMEM_LIMIT_BYTES,
        ),
        cost_estimate=pl.CostEstimate(
            flops=0, transcendentals=0, bytes_accessed=bytes_accessed),
    )(x2d)


@jax.jit
def car_classifier_forward(x: jax.Array) -> jax.Array:
    """Identity forward pass for the (abstract) CarClassifier.

    x: (B, C, H, W) NCHW — same convention as the PyTorch module.
    Returns an array with identical shape/dtype/values.
    """
    shape = x.shape
    total = 1
    for d in shape:
        total *= d
    itemsize = jnp.dtype(x.dtype).itemsize
    bytes_accessed = 2 * total * itemsize

    flat = x.reshape(-1)

    if total % _LANE == 0:
        # Lane-dense main path: exact factoring, no data padding anywhere.
        rows, L, tile_rows = _choose_layout(total, itemsize)
        out2d = _identity_copy_2d(flat.reshape(rows, L), tile_rows, L,
                                  bytes_accessed)
    else:
        # Ragged fallback (element count not a multiple of 128): (1, total)
        # layout, masked partial last lane-tile — still no host-side pad/slice.
        # TODO(synk): single-sublane layout wastes 7/8 of each VMEM tile; only
        #             hit for odd element counts, never the common NCHW case.
        tile_cols = max(_LANE, (_TILE_BYTES_TARGET // itemsize) // _LANE * _LANE)
        if tile_cols >= total:
            tile_cols = total            # single block; block dims == array dims
        out2d = _identity_copy_2d(flat.reshape(1, total), 1, tile_cols,
                                  bytes_accessed)

    return out2d.reshape(shape)


if __name__ == "__main__":
    key = jax.random.PRNGKey(0)
    # Small NCHW input consistent with an image-classifier module.
    x = jax.random.normal(key, (2, 4, 16, 16), dtype=jnp.float32)

    y = car_classifier_forward(x)
    y = jax.block_until_ready(y)

    assert y.shape == x.shape and y.dtype == x.dtype
    assert bool(jnp.allclose(y, x)), "identity pass-through mismatch"
    print("KERNEL_OK")
</pallas_src>

<mosaic_0001>
module attributes {stable_mosaic.version = 11 : i64} {
  func.func @_copy_kernel(%arg0: i32, %arg1: i32, %arg2: memref<1x2048xf32, #tpu.memory_space<vmem>>, %arg3: memref<1x2048xf32, #tpu.memory_space<vmem>>) attributes {dimension_semantics = [#tpu.dimension_semantics<parallel>, #tpu.dimension_semantics<parallel>], iteration_bounds = array<i64: 1, 1>, scalar_prefetch = 0 : i64, scratch_operands = 0 : i64, tpu.core_type = #tpu.core_type<tc>, window_params = [{transform_indices = @transform_0, window_bounds = array<i64: 1, 2048>}, {transform_indices = @transform_1, window_bounds = array<i64: 1, 2048>}]} {
    %c0 = arith.constant 0 : index
    %c0_0 = arith.constant 0 : index
    %0 = vector.load %arg2[%c0, %c0_0] : memref<1x2048xf32, #tpu.memory_space<vmem>>, vector<1x2048xf32>
    %c0_1 = arith.constant 0 : index
    %c0_2 = arith.constant 0 : index
    %1 = vector.load %arg3[%c0_1, %c0_2] : memref<1x2048xf32, #tpu.memory_space<vmem>>, vector<1x2048xf32>
    tpu.vector_store %arg3[%c0_1, %c0_2], %0 {strides = array<i32>} : memref<1x2048xf32, #tpu.memory_space<vmem>>, vector<1x2048xf32>,
    return
  }
  func.func @transform_0(%arg0: i32, %arg1: i32) -> (i32, i32) {
    %c0_i32 = arith.constant 0 : i32
    return %arg0, %arg1 : i32, i32
  }
  func.func @transform_1(%arg0: i32, %arg1: i32) -> (i32, i32) {
    %c0_i32 = arith.constant 0 : i32
    return %arg0, %arg1 : i32, i32
  }
}

</mosaic_0001>

<bundles_post_ra>
// kernel: car_classifier_forward.1
= control target key start
LH: loop header
LB: loop body
LE: loop exit
PB: predicated region body
PF: predicated region fallthrough
CT: control target
= control target key end

     0   :  { %s38_s0 = inlined_call_operand.vmem [shape: f32[1,2048], index: 0, kind: input, shape index: {}]   ;;  %s39_s1 = inlined_call_operand.vmem [shape: f32[1,2048], index: 1, kind: output, shape index: {}]  }
   0x1   :  { %v8_v0 = vld [vmem:[%s38_s0] sm:$0xff]  ;;  %v9_v1 = vld [vmem:[%s38_s0 + $0x8] sm:$0xff] }
   0x2   :  { %10 = vst [vmem:[%s39_s1] sm:$0xff] %v8_v0  ;;  %11 = vst [vmem:[%s39_s1 + $0x8] sm:$0xff] %v9_v1 }

</bundles_post_ra>
